<compile_context>
chip_gen: v6e
topology: v6e:2x2x1
jax: 0.10.0
libtpu: 0.0.40
codegen_flags: <defaults>
</compile_context>

<pallas_src>
import math

import numpy as np
import jax
import jax.numpy as jnp
from jax.experimental import pallas as pl
from jax.experimental.pallas import tpu as pltpu

NEG_SLOPE = 0.01  # nn.LeakyReLU() default negative_slope

_TILE_VMEM_BUDGET_BYTES = 20 * 1024 * 1024   # 2x(in+out) tiles + 2x M must fit here
_VMEM_LIMIT_BYTES = 32 * 1024 * 1024         # explicit scoped-VMEM limit (all gens)
_MAX_ROWS_PER_BLOCK = 8192
_PACKED_M_BYTES_CAP = 2 * 1024 * 1024        # don't let the packed M blow up VMEM/HBM
_MULTI_STEP_BYTES = 4 * 1024 * 1024          # force >=2 grid steps above this size (v7x)


def _lrelu_resize_kernel(x_ref, m_ref, o_ref):
    # x_ref: (bt, kin)   m_ref: (kin, kout)   o_ref: (bt, kout)
    x = x_ref[...]
    y = jnp.maximum(x, NEG_SLOPE * x)                                 # LeakyReLU (VPU)
    o = jnp.dot(y, m_ref[...], preferred_element_type=jnp.float32)    # fused resize (MXU)
    o_ref[...] = o.astype(o_ref.dtype)


def _avgpool_matrix(in_size, k, stride, pad):
    """Row-resize matrix for AvgPool (count_include_pad=True, PyTorch default)."""
    out_size = (in_size + 2 * pad - k) // stride + 1
    m = np.zeros((out_size, in_size), np.float32)
    for o in range(out_size):
        start = o * stride - pad
        for i in range(start, start + k):
            if 0 <= i < in_size:
                m[o, i] = 1.0 / k  # padded zeros still counted in divisor
    return m


def _nearest_matrix(in_size, out_size):
    """Row-resize matrix for F.interpolate(mode='nearest')."""
    m = np.zeros((out_size, in_size), np.float32)
    for o in range(out_size):
        i = min((o * in_size) // out_size, in_size - 1)
        m[o, i] = 1.0
    return m


def _round_up(x, m):
    return ((x + m - 1) // m) * m


class LReLuRegularPallas:
    """JAX/Pallas counterpart of LReLu_regular. No learned parameters."""

    def __init__(self, in_channels, out_channels, in_size, out_size,
                 in_sampling_rate, out_sampling_rate):
        self.in_channels = in_channels
        self.out_channels = out_channels
        self.in_size = in_size
        self.out_size = out_size
        self.in_sampling_rate = in_sampling_rate
        self.out_sampling_rate = out_sampling_rate

        if in_sampling_rate == 2 * out_sampling_rate:
            a = _avgpool_matrix(in_size, 2, 2, 0)
        elif in_sampling_rate == 4 * out_sampling_rate:
            a = _avgpool_matrix(in_size, 4, 4, 1)
        else:
            a = _nearest_matrix(in_size, out_size)

        # Square spatial dims (in_size == H == W): out = A @ y @ A.T per plane.
        # Fused Kronecker form over flattened planes:
        #   M[h*W+w, o*Wo+q] = a[o,h] * a[q,w]  ==>  M = kron(a.T, a.T)
        self._out_hw = a.shape[0]
        self._m_base = np.kron(a.T, a.T).astype(np.float32)   # (H*W, Ho*Wo)
        self._m_cache = {}                                     # (G, dtype) -> jnp array

    # -------------------------- helpers --------------------------

    def _get_m(self, g, dtype):
        key = (g, jnp.dtype(dtype).name)
        m = self._m_cache.get(key)
        if m is None:
            mat = self._m_base if g == 1 else np.kron(
                np.eye(g, dtype=np.float32), self._m_base)     # block-diagonal
            m = jnp.asarray(mat, dtype=dtype)
            self._m_cache[key] = m
        return m

    @staticmethod
    def _row_block(rows, kin, kout, itemsize, m_bytes):
        """Rows-per-block sized against the VMEM budget (M counted double-buffered)."""
        pack = max(8, 32 // itemsize)                 # sublane pack: 8 f32 / 16 bf16 / 32 i8
        per_row = itemsize * (kin + kout)
        avail = max(0, _TILE_VMEM_BUDGET_BYTES - 2 * m_bytes)
        bt = max(pack, (avail // (2 * per_row)) // pack * pack)
        bt = min(bt, _MAX_ROWS_PER_BLOCK)
        # v7x: keep >=2 grid steps for large tensors so both TensorCores get work.
        if rows * per_row > _MULTI_STEP_BYTES:
            bt = min(bt, _round_up(-(-rows // 2), pack))
        bt = min(bt, _round_up(rows, pack))
        return max(bt, pack)

    # -------------------------- forward --------------------------

    def __call__(self, x):
        # x: (N, C, H, W), NCHW like PyTorch.
        n, c, h, w = x.shape
        ho = wo = self._out_hw
        ncol = ho * wo
        p = n * c
        itemsize = jnp.dtype(x.dtype).itemsize

        # Pack G planes per matmul row so the stored output row width is a
        # multiple of 128 (lane-dense vst) with no extra HBM writeback bytes.
        g = 1
        g_target = 128 // math.gcd(ncol, 128)
        if g_target > 1 and p % g_target == 0:
            packed_m_bytes = (g_target * h * w) * (g_target * ncol) * itemsize
            if packed_m_bytes <= _PACKED_M_BYTES_CAP:
                g = g_target

        rows = p // g
        kin = g * h * w
        kout = g * ncol
        m = self._get_m(g, x.dtype)                     # keep matmul in input dtype
        m_bytes = kin * kout * itemsize
        bt = self._row_block(rows, kin, kout, itemsize, m_bytes)

        x2 = x.reshape(rows, kin)                       # contiguous -> free reshape

        out = pl.pallas_call(
            _lrelu_resize_kernel,
            out_shape=jax.ShapeDtypeStruct((rows, kout), x.dtype),
            grid=(pl.cdiv(rows, bt),),                  # ragged last block: no wrapper pad/slice
            in_specs=[
                pl.BlockSpec((bt, kin), lambda i: (i, 0)),
                pl.BlockSpec((kin, kout), lambda i: (0, 0)),   # grid-invariant resize matrix
            ],
            out_specs=pl.BlockSpec((bt, kout), lambda i: (i, 0)),
            compiler_params=pltpu.CompilerParams(
                dimension_semantics=("parallel",),
                vmem_limit_bytes=_VMEM_LIMIT_BYTES),
        )(x2, m)

        return out.reshape(n, c, ho, wo)                # contiguous -> free reshape


# ---------------------------- references (pure JAX) ----------------------------

def _leaky(x):
    return jnp.where(x >= 0, x, NEG_SLOPE * x)


def _ref_pool2(x):
    y = _leaky(x)
    n, c, h, w = y.shape
    return y.reshape(n, c, h // 2, 2, w // 2, 2).mean(axis=(3, 5))


def _ref_pool4_pad1(x):
    y = _leaky(x)
    y = jnp.pad(y, ((0, 0), (0, 0), (1, 1), (1, 1)))
    n, c, h, w = y.shape
    ho = (h - 4) // 4 + 1
    wo = (w - 4) // 4 + 1
    y = y[:, :, : ho * 4, : wo * 4]
    return y.reshape(n, c, ho, 4, wo, 4).mean(axis=(3, 5))


def _ref_nearest(x, out_size):
    y = _leaky(x)
    h = y.shape[2]
    idx = (np.arange(out_size) * h) // out_size
    return y[:, :, idx, :][:, :, :, idx]


# ------------------------------------ main ------------------------------------

if __name__ == "__main__":
    key = jax.random.PRNGKey(0)
    N, C, S = 2, 4, 16
    x = jax.random.normal(key, (N, C, S, S), dtype=jnp.float32)

    # Branch 1: in_sr == 2 * out_sr  -> AvgPool2d(2, 2, 0). (packed G=2, lane-dense out)
    m1 = LReLuRegularPallas(C, C, S, S // 2, in_sampling_rate=2, out_sampling_rate=1)
    o1 = jax.block_until_ready(m1(x))
    assert o1.shape == (N, C, 8, 8)
    np.testing.assert_allclose(np.asarray(o1), np.asarray(_ref_pool2(x)),
                               rtol=1e-5, atol=1e-5)

    # Branch 2: in_sr == 4 * out_sr  -> AvgPool2d(4, 4, 1). (packed G=8, lane-dense out)
    m2 = LReLuRegularPallas(C, C, S, S // 4, in_sampling_rate=4, out_sampling_rate=1)
    o2 = jax.block_until_ready(m2(x))
    assert o2.shape == (N, C, 4, 4)
    np.testing.assert_allclose(np.asarray(o2), np.asarray(_ref_pool4_pad1(x)),
                               rtol=1e-5, atol=1e-5)

    # Branch 3: otherwise -> nearest interpolate to out_size. (packing declined: M too big)
    m3 = LReLuRegularPallas(C, C, S, 12, in_sampling_rate=3, out_sampling_rate=1)
    o3 = jax.block_until_ready(m3(x))
    assert o3.shape == (N, C, 12, 12)
    np.testing.assert_allclose(np.asarray(o3), np.asarray(_ref_nearest(x, 12)),
                               rtol=1e-5, atol=1e-5)

    # Extra: plane count not divisible by the packing group / block batch
    # (ragged last block path — no wrapper padding or slicing involved).
    x_tail = jax.random.normal(jax.random.PRNGKey(1), (1, 3, S, S), dtype=jnp.float32)
    m_tail = LReLuRegularPallas(3, 3, S, S // 2, 2, 1)
    o_tail = jax.block_until_ready(m_tail(x_tail))
    assert o_tail.shape == (1, 3, 8, 8)
    np.testing.assert_allclose(np.asarray(o_tail), np.asarray(_ref_pool2(x_tail)),
                               rtol=1e-5, atol=1e-5)

    print("KERNEL_OK")
</pallas_src>

<mosaic_0001>
module attributes {stable_mosaic.version = 11 : i64} {
  func.func @_lrelu_resize_kernel(%arg0: i32, %arg1: memref<8x512xf32, #tpu.memory_space<vmem>>, %arg2: memref<512x128xf32, #tpu.memory_space<vmem>>, %arg3: memref<8x128xf32, #tpu.memory_space<vmem>>) attributes {dimension_semantics = [#tpu.dimension_semantics<parallel>], iteration_bounds = array<i64: 1>, scalar_prefetch = 0 : i64, scratch_operands = 0 : i64, tpu.core_type = #tpu.core_type<tc>, window_params = [{transform_indices = @transform_0, window_bounds = array<i64: 8, 512>}, {pipeline_mode = #tpu.pipeline_mode<synchronous>, transform_indices = @transform_1, window_bounds = array<i64: 512, 128>}, {transform_indices = @transform_2, window_bounds = array<i64: 8, 128>}]} {
    %c0 = arith.constant 0 : index
    %c0_0 = arith.constant 0 : index
    %0 = vector.load %arg1[%c0, %c0_0] : memref<8x512xf32, #tpu.memory_space<vmem>>, vector<8x512xf32>
    %cst = arith.constant 0.00999999977 : f32
    %1 = vector.broadcast %cst : f32 to vector<8x512xf32>
    %2 = arith.mulf %1, %0 : vector<8x512xf32>
    %3 = arith.maximumf %0, %2 : vector<8x512xf32>
    %c0_1 = arith.constant 0 : index
    %c0_2 = arith.constant 0 : index
    %4 = vector.load %arg2[%c0_1, %c0_2] : memref<512x128xf32, #tpu.memory_space<vmem>>, vector<512x128xf32>
    %cst_3 = arith.constant dense<0.000000e+00> : vector<8x128xf32>
    %5 = tpu.matmul %3, %4, %cst_3 {dimension_numbers = #tpu.dot_dimension_numbers<[1], [0], [0], [1], [0, 0, 1, 1], [], []>} : vector<8x512xf32>, vector<512x128xf32>, vector<8x128xf32> -> vector<8x128xf32>
    %c0_4 = arith.constant 0 : index
    %c0_5 = arith.constant 0 : index
    %6 = vector.load %arg3[%c0_4, %c0_5] : memref<8x128xf32, #tpu.memory_space<vmem>>, vector<8x128xf32>
    tpu.vector_store %arg3[%c0_4, %c0_5], %5 {strides = array<i32>} : memref<8x128xf32, #tpu.memory_space<vmem>>, vector<8x128xf32>,
    return
  }
  func.func @transform_0(%arg0: i32) -> (i32, i32) {
    %c0_i32 = arith.constant 0 : i32
    %c0_i32_0 = arith.constant 0 : i32
    return %arg0, %c0_i32 : i32, i32
  }
  func.func @transform_1(%arg0: i32) -> (i32, i32) {
    %c0_i32 = arith.constant 0 : i32
    %c0_i32_0 = arith.constant 0 : i32
    %c0_i32_1 = arith.constant 0 : i32
    return %c0_i32, %c0_i32_0 : i32, i32
  }
  func.func @transform_2(%arg0: i32) -> (i32, i32) {
    %c0_i32 = arith.constant 0 : i32
    %c0_i32_0 = arith.constant 0 : i32
    return %arg0, %c0_i32 : i32, i32
  }
}

</mosaic_0001>

<bundles_post_ra>
// kernel: tpu_custom_call.1
= control target key start
LH: loop header
LB: loop body
LE: loop exit
PB: predicated region body
PF: predicated region fallthrough
CT: control target
= control target key end

     0   :  { %7 = vsyncpa [#allocation3], 0  ;;  %s465_s0 = inlined_call_operand.hbm [shape: f32[4,512], index: 0, kind: input, shape index: {}]   ;;  %s466_s1 = inlined_call_operand.hbm [shape: f32[512,128], index: 1, kind: input, shape index: {}]   ;;  %s467_s2 = inlined_call_operand.hbm [shape: f32[4,128], index: 2, kind: output, shape index: {}]  }
   0x1   :  { %8 = vsyncpa [#allocation6], 0 }
   0x2   :  { %9 = vsyncpa [#allocation4], 0 }
   0x3   :  { %14 = vsyncadd [#allocation3], 256  ;;  %s432_s9 = smov [#allocation2]  }
   0x4   :  { %s15_s10 = sshll.u32 %s432_s9, 4  ;;  %s16_s10 = int_to_ptr.vmem [resolvable:$true] %s15_s10 }
   0x5   :  { %s374_s11 = scalar_lea.vmem %s16_s10, 256  ;;  %s378_s12 = scalar_lea.vmem %s16_s10, 512 }
   0x6   :  { %p375_p0 = scmp.ne.s32.totalorder %s16_s10, %s374_s11  ;;  %p379_p1 = scmp.lt.s32.totalorder %s16_s10, %s16_s10 }
   0x7   :  { %p380_p2 = scmp.lt.s32.totalorder %s378_s12, %s374_s11 }
   0x9   :  { %p381_p3 = por %p380_p2, %p379_p1 }
   0xb   :  { %p382_p4 = pnand %p381_p3, %p375_p0 }
   0xd   :  { %385 = shalt.err (!%p382_p4)
}
   0xe   :  { %s433_s13 = smov 256   ;;  %s434_s14 = smov 16  }
   0xf   :  { %21 = dma.hbm_to_vmem [thread:$0]  %s465_s0, 256, %s16_s10, [#allocation3], %s433_s13, %s433_s13, %s434_s14  }
  0x10   :  { %s435_s17 = smov [#allocation5]  }
  0x11   :  { %s27_s18 = sshll.u32 %s435_s17, 4  ;;  %s28_s18 = int_to_ptr.vmem [resolvable:$true] %s27_s18 }
  0x12   :  { %s394_s19 = scalar_lea.vmem %s28_s18, 8192  ;;  %p399_p6 = scmp.lt.s32.totalorder %s28_s18, %s28_s18 }
  0x13   :  { %p395_p5 = scmp.ne.s32.totalorder %s28_s18, %s394_s19  ;;  %p400_p7 = scmp.lt.s32.totalorder %s394_s19, %s394_s19 }
  0x15   :  { %p401_p8 = por %p400_p7, %p399_p6 }
  0x17   :  { %p402_p9 = pnand %p401_p8, %p395_p5 }
  0x19   :  { %405 = shalt.err (!%p402_p9)
}
  0x1a   :  { %s436_s20 = smov 128   ;;  %s437_s21 = smov 8  }
  0x1b   :  { %33 = dma.hbm_to_vmem [thread:$0]  %s466_s1, 8192, %s28_s18, [#allocation6], %s436_s20, %s436_s20, %s437_s21  }
  0x1c   :  { %426 = dma.done.wait [#allocation3], 512  }
  0x1d   :  { %427 = vsyncadd [#allocation3], 4294966784 }
  0x1e   :  { %428 = dma.done.wait [#allocation6], 8192  }
  0x1f   :  { %429 = vsyncadd [#allocation6], 4294959104  ;;  %v83_v0 = vld [vmem:[#allocation5 + $0xf8] sm:$0xff]  ;;  %v82_v4 = vld [vmem:[#allocation5 + $0xf0] sm:$0xff] }
  0x20   :  { %v115_v1 = vld [vmem:[#allocation5 + $0x1f8] sm:$0xff]  ;;  %287 = vmatprep.subr.mxu0 %v83_v0  ;;  %v114_v5 = vld [vmem:[#allocation5 + $0x1f0] sm:$0xff]  ;;  %v81_v8 = vld [vmem:[#allocation5 + $0xe8] sm:$0xff] }
  0x21   :  { %v67_v2 = vld [vmem:[#allocation5 + $0x78] sm:$0xff]  ;;  %322 = vmatprep.subr.mxu1 %v115_v1  ;;  %v66_v6 = vld [vmem:[#allocation5 + $0x70] sm:$0xff]  ;;  %v113_v9 = vld [vmem:[#allocation5 + $0x1e8] sm:$0xff] }
  0x22   :  { %v99_v3 = vld [vmem:[#allocation5 + $0x178] sm:$0xff]  ;;  %288 = vmatpush3.msra.mxu0 %v67_v2  ;;  %v98_v7 = vld [vmem:[#allocation5 + $0x170] sm:$0xff]  ;;  %v65_v10 = vld [vmem:[#allocation5 + $0x68] sm:$0xff] }
  0x23   :  { %323 = vmatpush3.msra.mxu1 %v99_v3  ;;  %289 = vmatprep.subr.mxu0 %v82_v4  ;;  %v97_v11 = vld [vmem:[#allocation5 + $0x168] sm:$0xff]  ;;  %v80_v12 = vld [vmem:[#allocation5 + $0xe0] sm:$0xff]  ;;  %v79_v16 = vld [vmem:[#allocation5 + $0xd8] sm:$0xff] }
  0x24   :  { %324 = vmatprep.subr.mxu1 %v114_v5  ;;  %290 = vmatpush3.msra.mxu0 %v66_v6  ;;  %v112_v13 = vld [vmem:[#allocation5 + $0x1e0] sm:$0xff]  ;;  %v111_v17 = vld [vmem:[#allocation5 + $0x1d8] sm:$0xff]  ;;  %v78_v20 = vld [vmem:[#allocation5 + $0xd0] sm:$0xff] }
  0x25   :  { %325 = vmatpush3.msra.mxu1 %v98_v7  ;;  %291 = vmatprep.subr.mxu0 %v81_v8  ;;  %v64_v14 = vld [vmem:[#allocation5 + $0x60] sm:$0xff]  ;;  %v63_v18 = vld [vmem:[#allocation5 + $0x58] sm:$0xff]  ;;  %v110_v21 = vld [vmem:[#allocation5 + $0x1d0] sm:$0xff] }
  0x26   :  { %326 = vmatprep.subr.mxu1 %v113_v9  ;;  %v96_v15 = vld [vmem:[#allocation5 + $0x160] sm:$0xff]  ;;  %292 = vmatpush3.msra.mxu0 %v65_v10  ;;  %v95_v19 = vld [vmem:[#allocation5 + $0x158] sm:$0xff]  ;;  %v62_v22 = vld [vmem:[#allocation5 + $0x50] sm:$0xff] }
  0x27   :  { %327 = vmatpush3.msra.mxu1 %v97_v11  ;;  %293 = vmatprep.subr.mxu0 %v80_v12  ;;  %v94_v23 = vld [vmem:[#allocation5 + $0x150] sm:$0xff]  ;;  %v77_v24 = vld [vmem:[#allocation5 + $0xc8] sm:$0xff]  ;;  %v76_v28 = vld [vmem:[#allocation5 + $0xc0] sm:$0xff] }
  0x28   :  { %328 = vmatprep.subr.mxu1 %v112_v13  ;;  %294 = vmatpush3.msra.mxu0 %v64_v14  ;;  %v109_v25 = vld [vmem:[#allocation5 + $0x1c8] sm:$0xff]  ;;  %v108_v29 = vld [vmem:[#allocation5 + $0x1c0] sm:$0xff]  ;;  %v75_v32 = vld [vmem:[#allocation5 + $0xb8] sm:$0xff] }
  0x29   :  { %329 = vmatpush3.msra.mxu1 %v96_v15  ;;  %295 = vmatprep.subr.mxu0 %v79_v16  ;;  %v61_v26 = vld [vmem:[#allocation5 + $0x48] sm:$0xff]  ;;  %v60_v30 = vld [vmem:[#allocation5 + $0x40] sm:$0xff]  ;;  %v107_v33 = vld [vmem:[#allocation5 + $0x1b8] sm:$0xff] }
  0x2a   :  { %330 = vmatprep.subr.mxu1 %v111_v17  ;;  %296 = vmatpush3.msra.mxu0 %v63_v18  ;;  %v93_v27 = vld [vmem:[#allocation5 + $0x148] sm:$0xff]  ;;  %v92_v31 = vld [vmem:[#allocation5 + $0x140] sm:$0xff]  ;;  %v59_v34 = vld [vmem:[#allocation5 + $0x38] sm:$0xff] }
  0x2b   :  { %331 = vmatpush3.msra.mxu1 %v95_v19  ;;  %297 = vmatprep.subr.mxu0 %v78_v20  ;;  %v91_v35 = vld [vmem:[#allocation5 + $0x138] sm:$0xff]  ;;  %v74_v36 = vld [vmem:[#allocation5 + $0xb0] sm:$0xff]  ;;  %v73_v40 = vld [vmem:[#allocation5 + $0xa8] sm:$0xff] }
  0x2c   :  { %332 = vmatprep.subr.mxu1 %v110_v21  ;;  %298 = vmatpush3.msra.mxu0 %v62_v22  ;;  %v106_v37 = vld [vmem:[#allocation5 + $0x1b0] sm:$0xff]  ;;  %v105_v41 = vld [vmem:[#allocation5 + $0x1a8] sm:$0xff]  ;;  %v72_v44 = vld [vmem:[#allocation5 + $0xa0] sm:$0xff] }
  0x2d   :  { %333 = vmatpush3.msra.mxu1 %v94_v23  ;;  %299 = vmatprep.subr.mxu0 %v77_v24  ;;  %v58_v38 = vld [vmem:[#allocation5 + $0x30] sm:$0xff]  ;;  %v57_v42 = vld [vmem:[#allocation5 + $0x28] sm:$0xff]  ;;  %v104_v45 = vld [vmem:[#allocation5 + $0x1a0] sm:$0xff] }
  0x2e   :  { %334 = vmatprep.subr.mxu1 %v109_v25  ;;  %300 = vmatpush3.msra.mxu0 %v61_v26  ;;  %v90_v39 = vld [vmem:[#allocation5 + $0x130] sm:$0xff]  ;;  %v89_v43 = vld [vmem:[#allocation5 + $0x128] sm:$0xff]  ;;  %v56_v46 = vld [vmem:[#allocation5 + $0x20] sm:$0xff] }
  0x2f   :  { %335 = vmatpush3.msra.mxu1 %v93_v27  ;;  %301 = vmatprep.subr.mxu0 %v76_v28  ;;  %v88_v47 = vld [vmem:[#allocation5 + $0x120] sm:$0xff]  ;;  %v71_v48 = vld [vmem:[#allocation5 + $0x98] sm:$0xff]  ;;  %v42_v51 = vld [vmem:[#allocation2 + $0x10] sm:$0xff] }
  0x30   :  { %336 = vmatprep.subr.mxu1 %v108_v29  ;;  %302 = vmatpush3.msra.mxu0 %v60_v30  ;;  %v103_v49 = vld [vmem:[#allocation5 + $0x198] sm:$0xff]  ;;  %v40_v50 = vld [vmem:[#allocation2] sm:$0xff]  ;;  %v46_v53 = vmul.f32 0.01, %v42_v51  ;;  %v41_v54 = vld [vmem:[#allocation2 + $0x8] sm:$0xff] }
  0x31   :  { %337 = vmatpush3.msra.mxu1 %v92_v31  ;;  %303 = vmatprep.subr.mxu0 %v75_v32  ;;  %v44_v52 = vmul.f32 0.01, %v40_v50  ;;  %v43_v55 = vld [vmem:[#allocation2 + $0x18] sm:$0xff]  ;;  %v45_v58 = vmul.f32 0.01, %v41_v54  ;;  %v70_v60 = vld [vmem:[#allocation5 + $0x90] sm:$0xff] }
  0x32   :  { %338 = vmatprep.subr.mxu1 %v107_v33  ;;  %304 = vmatpush3.msra.mxu0 %v59_v34  ;;  %v55_v56 = vld [vmem:[#allocation5 + $0x18] sm:$0xff]  ;;  %v47_v59 = vmul.f32 0.01, %v43_v55  ;;  %v102_v61 = vld [vmem:[#allocation5 + $0x190] sm:$0xff]  ;;  %v50_v63 = vmax.f32 %v42_v51, %v46_v53  ;;  %v69_v4 = vld [vmem:[#allocation5 + $0x88] sm:$0xff] }
  0x33   :  { %339 = vmatpush3.msra.mxu1 %v91_v35  ;;  %305 = vmatprep.subr.mxu0 %v74_v36  ;;  %v87_v57 = vld [vmem:[#allocation5 + $0x118] sm:$0xff]  ;;  %v48_v62 = vmax.f32 %v40_v50, %v44_v52  ;;  %v54_v0 = vld [vmem:[#allocation5 + $0x10] sm:$0xff]  ;;  %v49_v2 = vmax.f32 %v41_v54, %v45_v58  ;;  %v101_v5 = vld [vmem:[#allocation5 + $0x188] sm:$0xff] }
  0x34   :  { %340 = vmatprep.subr.mxu1 %v106_v37  ;;  %306 = vmatpush3.msra.mxu0 %v58_v38  ;;  %v86_v1 = vld [vmem:[#allocation5 + $0x110] sm:$0xff]  ;;  %v51_v3 = vmax.f32 %v43_v55, %v47_v59  ;;  %v53_v6 = vld [vmem:[#allocation5 + $0x8] sm:$0xff]  ;;  %v68_v8 = vld [vmem:[#allocation5 + $0x80] sm:$0xff] }
  0x35   :  { %341 = vmatpush3.msra.mxu1 %v90_v39  ;;  %307 = vmatprep.subr.mxu0 %v73_v40  ;;  %v85_v7 = vld [vmem:[#allocation5 + $0x108] sm:$0xff]  ;;  %v100_v9 = vld [vmem:[#allocation5 + $0x180] sm:$0xff]  ;;  %v121_v10 = vcombine.high %v48_v62, %v50_v63  ;;  %v120_v14 = vcombine.low %v48_v62, %v50_v63 }
  0x36   :  { %342 = vmatprep.subr.mxu1 %v105_v41  ;;  %308 = vmatpush3.msra.mxu0 %v57_v42  ;;  %v52_v11 = vld [vmem:[#allocation5] sm:$0xff]  ;;  %v123_v12 = vcombine.high %v49_v2, %v51_v3  ;;  %v122_v15 = vcombine.low %v49_v2, %v51_v3 }
  0x37   :  { %343 = vmatpush3.msra.mxu1 %v89_v43  ;;  %309 = vmatprep.subr.mxu0 %v72_v44  ;;  %v84_v13 = vld [vmem:[#allocation5 + $0x100] sm:$0xff] }
  0x38   :  { %344 = vmatprep.subr.mxu1 %v104_v45  ;;  %310 = vmatpush3.msra.mxu0 %v56_v46 }
  0x39   :  { %345 = vmatpush3.msra.mxu1 %v88_v47  ;;  %311 = vmatprep.subr.mxu0 %v71_v48 }
  0x3a   :  { %346 = vmatprep.subr.mxu1 %v103_v49  ;;  %312 = vmatpush3.msra.mxu0 %v55_v56 }
  0x3b   :  { %347 = vmatpush3.msra.mxu1 %v87_v57  ;;  %313 = vmatprep.subr.mxu0 %v70_v60 }
  0x3c   :  { %348 = vmatprep.subr.mxu1 %v102_v61  ;;  %314 = vmatpush3.msra.mxu0 %v54_v0 }
  0x3d   :  { %349 = vmatpush3.msra.mxu1 %v86_v1  ;;  %315 = vmatprep.subr.mxu0 %v69_v4 }
  0x3e   :  { %350 = vmatprep.subr.mxu1 %v101_v5  ;;  %316 = vmatpush3.msra.mxu0 %v53_v6 }
  0x3f   :  { %351 = vmatpush3.msra.mxu1 %v85_v7  ;;  %317 = vmatprep.subr.mxu0 %v68_v8 }
  0x40   :  { %352 = vmatprep.subr.mxu1 %v100_v9  ;;  %318 = vmatpush3.msra.mxu0 %v52_v11 }
  0x41   :  { %192 = vmatprep.mubr.f32.mxu0 %v121_v10  ;;  %353 = vmatpush3.msra.mxu1 %v84_v13 }
  0x42   :  { %262 = vmatprep.mubr.f32.mxu1 %v123_v12  ;;  %193 = vmatmul.mubr.f32.vlgmr.msra.gmra.mxu0 %v120_v14 }
  0x43   :  { %263 = vmatmul.mubr.f32.vlgmr.msra.gmra.mxu1 %v122_v15 }
 0x102   :  { %v319_v16 = vpop.f32.mrf.mxu0 }
 0x103   :  { %v354_v17 = vpop.f32.mrf.mxu1 }
 0x104   :  { %v320_v18 = vpop.f32.mrf.mxu0 }
 0x105   :  { %v355_v19 = vpop.f32.mrf.mxu1  ;;  %v321_v20 = vadd.f32 %v320_v18, %v319_v16 }
 0x106   :  { %v356_v21 = vadd.f32 %v355_v19, %v354_v17 }
 0x108   :  { %v265_v22 = vadd.f32 %v356_v21, %v321_v20 }
 0x10a   :  { %268 = vst [vmem:[#allocation7] sm:$0xff] %v265_v22 }
 0x10b   :  { %273 = vsyncadd [#allocation4], 64  ;;  %s438_s0 = smov [#allocation7]  }
 0x10c   :  { %s274_s1 = sshll.u32 %s438_s0, 4  ;;  %s275_s1 = int_to_ptr.vmem [resolvable:$true] %s274_s1 }
 0x10d   :  { %s406_s24 = scalar_lea.vmem %s275_s1, 64  ;;  %s410_s25 = scalar_lea.vmem %s275_s1, 128 }
 0x10e   :  { %p407_p10 = scmp.ne.s32.totalorder %s275_s1, %s406_s24  ;;  %p411_p11 = scmp.lt.s32.totalorder %s275_s1, %s275_s1 }
 0x10f   :  { %p412_p12 = scmp.lt.s32.totalorder %s410_s25, %s406_s24 }
 0x111   :  { %p413_p13 = por %p412_p12, %p411_p11 }
 0x113   :  { %p414_p0 = pnand %p413_p13, %p407_p10 }
 0x115   :  { %417 = shalt.err (!%p414_p0)
}
 0x116   :  { %s439_s26 = smov 64   ;;  %s440_s27 = smov 4  }
 0x117   :  { %280 = dma.vmem_to_hbm [thread:$0]  %s275_s1, 64, %s467_s2, [#allocation4], %s439_s26, %s439_s26, %s440_s27  }
 0x118   :  { %430 = dma.done.wait [#allocation4], 128  }
 0x119   :  { %431 = vsyncadd [#allocation4], 4294967168 }
 0x11a   :  { %284 = vsyncpa [#allocation3], 1 }
 0x11b   :  { %285 = vsyncpa [#allocation6], 1 }
 0x11c   :  { %286 = vsyncpa [#allocation4], 1 }

</bundles_post_ra>
